<compile_context>
chip_gen: v7x
topology: tpu7x:2x2x1
jax: 0.10.0
libtpu: 0.0.40
codegen_flags: <defaults>
</compile_context>

<pallas_src>
import functools

import jax
import jax.numpy as jnp
from jax import lax
from jax.experimental import pallas as pl
from jax.experimental.pallas import tpu as pltpu


def _round_up(x, m):
    return (x + m - 1) // m * m


def _cdiv(a, b):
    return -(-a // b)


def _vmem_capacity_bytes():
    """Physical VMEM per TensorCore; conservative fallback if query fails."""
    try:
        cap = getattr(pltpu.get_tpu_info(), "vmem_capacity_bytes", None)
        if cap:
            return int(cap)
    except Exception:
        pass
    return 64 * 1024 * 1024


# ---------------------------------------------------------------------------
# Pass 1: packed per-row [sum, sum-of-squares], accumulated over HW tiles.
# Grid = (hw_chunks, row_blocks, hw_inner); the last axis is the reduction
# ("arbitrary"); output block is resident across it (init via pl.when).
# ---------------------------------------------------------------------------
def _row_stats_kernel(x_ref, stat_ref, *, hw, lane_tile, n_inner, need_mask):
    j = pl.program_id(2)

    @pl.when(j == 0)
    def _():
        stat_ref[...] = jnp.zeros_like(stat_ref)

    x = x_ref[...].astype(jnp.float32)               # (row_tile, lane_tile)
    if need_mask:
        # Ragged HW edge: zero the lanes beyond the true spatial size.
        start = (pl.program_id(0) * n_inner + j) * lane_tile
        lane = lax.broadcasted_iota(jnp.int32, x.shape, 1) + start
        x = jnp.where(lane < hw, x, 0.0)

    s = jnp.sum(x, axis=-1, keepdims=True)            # (row_tile, 1)
    sq = jnp.sum(x * x, axis=-1, keepdims=True)       # (row_tile, 1)
    # Pack [sum, sumsq] into lanes 0/1 of a single (row_tile, 2) accumulator
    # (one writeback DMA per row block instead of two 1-wide ones).
    col = lax.broadcasted_iota(jnp.int32, (s.shape[0], 2), 1)
    stat_ref[...] += jnp.where(col == 0, s, sq)


# ---------------------------------------------------------------------------
# Pass 2: elementwise normalize with per-row fused scale/shift.
# ---------------------------------------------------------------------------
def _normalize_kernel(x_ref, scale_ref, shift_ref, o_ref):
    x = x_ref[...].astype(jnp.float32)                 # (row_tile, lane_tile)
    o_ref[...] = (x * scale_ref[...] + shift_ref[...]).astype(o_ref.dtype)


def switch_norm_2d(x, weight, bias, mean_weight, var_weight, eps=1e-5,
                   row_tile_max=512, lane_tile_max=4096):
    """Forward of SwitchNorm2d (training mode, using_bn=True).

    x: (N, C, H, W); weight/bias: (1, C, 1, 1); mean_weight/var_weight: (3,)
    """
    N, C, H, W = x.shape
    NC, HW = N * C, H * W
    itemsize = jnp.dtype(x.dtype).itemsize
    sub_base = {1: 32, 2: 16, 4: 8}.get(itemsize, 8)   # packed sublane minimum

    # Generation-aware budgets.
    vmem_cap = _vmem_capacity_bytes()
    if vmem_cap >= (96 << 20):            # 128 MiB VMEM parts (v5e / v6e)
        blk_budget, vmem_cap_limit = 4 << 20, 64 << 20
    else:                                 # 64 MiB-per-TC parts (v7x)
        blk_budget, vmem_cap_limit = 2 << 20, 40 << 20

    # Lane tile first (lane-dense is the bandwidth lever), then rows under the
    # per-block budget.  Tiles need NOT divide the array; grid uses cdiv and
    # ragged edges are masked / clamped.
    lane_tile = min(_round_up(HW, 128), lane_tile_max)
    if lane_tile > HW:
        lane_tile = HW                    # full-extent minor dim is allowed
    rows_budget = max(sub_base,
                      (blk_budget // (lane_tile * itemsize)) // sub_base * sub_base)
    row_tile = min(_round_up(NC, sub_base), row_tile_max, rows_budget)
    if row_tile > NC:
        row_tile = NC                     # full-extent second-minor dim

    n_row_blocks = _cdiv(NC, row_tile)
    n_lane_blocks = _cdiv(HW, lane_tile)
    # With a single row block, split HW into two "parallel" chunks so both
    # v7x TensorCores get pass-1 work (chunks merged in the fold below).
    n_chunks = 2 if (n_row_blocks == 1 and n_lane_blocks >= 4
                     and n_lane_blocks % 2 == 0) else 1
    n_inner = n_lane_blocks // n_chunks
    need_mask = (HW % lane_tile) != 0

    blk_in = row_tile * lane_tile * itemsize
    blk_f32 = row_tile * lane_tile * 4
    vmem_limit = int(min(vmem_cap_limit,
                         max(16 << 20, 4 * blk_in + 3 * blk_f32 + (1 << 20))))

    x2 = x.reshape(NC, HW)                # contiguous reshape, no copy

    # -- Pass 1: packed per-row sums / sums of squares ----------------------
    row_stats = pl.pallas_call(
        functools.partial(_row_stats_kernel, hw=HW, lane_tile=lane_tile,
                          n_inner=n_inner, need_mask=need_mask),
        out_shape=jax.ShapeDtypeStruct((n_chunks, NC, 2), jnp.float32),
        grid=(n_chunks, n_row_blocks, n_inner),
        in_specs=[pl.BlockSpec((row_tile, lane_tile),
                               lambda c, i, j: (i, c * n_inner + j))],
        out_specs=pl.BlockSpec((None, row_tile, 2), lambda c, i, j: (c, i, 0)),
        compiler_params=pltpu.CompilerParams(
            dimension_semantics=("parallel", "parallel", "arbitrary"),
            vmem_limit_bytes=vmem_limit),
    )(x2)

    # -- Tiny fold stage (O(N*C) scalars, plain JAX) -------------------------
    stats = jnp.sum(row_stats, axis=0)                       # (NC, 2)
    hw = float(HW)
    den = float(max(HW - 1, 1))                              # guard H*W == 1
    mean_in = (stats[:, 0] / hw).reshape(N, C)
    sq = stats[:, 1].reshape(N, C)
    # Unbiased IN variance over HW (matches torch .var(-1)).  Uses the
    # E[x^2]-E[x]^2 form in f32; the max(var, 0) below guards cancellation.
    var_in = (sq - hw * mean_in * mean_in) / den

    mean_ln = jnp.mean(mean_in, axis=1, keepdims=True)       # (N, 1)
    temp = var_in + mean_in * mean_in
    var_ln = jnp.mean(temp, axis=1, keepdims=True) - mean_ln * mean_ln
    mean_bn = jnp.mean(mean_in, axis=0, keepdims=True)       # (1, C)
    var_bn = jnp.mean(temp, axis=0, keepdims=True) - mean_bn * mean_bn

    mw = jax.nn.softmax(mean_weight.astype(jnp.float32), axis=0)
    vw = jax.nn.softmax(var_weight.astype(jnp.float32), axis=0)

    mean = mw[0] * mean_in + mw[1] * mean_ln + mw[2] * mean_bn   # (N, C)
    var = vw[0] * var_in + vw[1] * var_ln + vw[2] * var_bn       # (N, C)
    var = jnp.maximum(var, 0.0)

    inv_std = lax.rsqrt(var + eps)                               # (N, C)
    gamma = weight.reshape(1, C).astype(jnp.float32)
    beta = bias.reshape(1, C).astype(jnp.float32)
    scale = (gamma * inv_std).reshape(NC, 1)                     # (N*C, 1)
    shift = (beta - mean * gamma * inv_std).reshape(NC, 1)       # (N*C, 1)

    # TODO(synk): running_mean / running_var moving-average buffer updates are
    # training-time side effects that do not affect the forward output; not
    # materialized here.

    # -- Pass 2: lane-dense elementwise normalize ----------------------------
    out2 = pl.pallas_call(
        _normalize_kernel,
        out_shape=jax.ShapeDtypeStruct((NC, HW), x.dtype),
        grid=(n_row_blocks, n_lane_blocks),
        in_specs=[pl.BlockSpec((row_tile, lane_tile), lambda i, j: (i, j)),
                  pl.BlockSpec((row_tile, 1), lambda i, j: (i, 0)),
                  pl.BlockSpec((row_tile, 1), lambda i, j: (i, 0))],
        out_specs=pl.BlockSpec((row_tile, lane_tile), lambda i, j: (i, j)),
        compiler_params=pltpu.CompilerParams(
            dimension_semantics=("parallel", "parallel"),
            vmem_limit_bytes=vmem_limit),
    )(x2, scale, shift)

    return out2.reshape(N, C, H, W)       # contiguous reshape, no copy


def _reference(x, weight, bias, mean_weight, var_weight, eps=1e-5):
    # Pure-JAX reference mirroring the PyTorch forward (training mode).
    N, C, H, W = x.shape
    xr = x.reshape(N, C, -1).astype(jnp.float32)
    mean_in = xr.mean(-1, keepdims=True)
    var_in = jnp.sum((xr - mean_in) ** 2, axis=-1, keepdims=True) / (H * W - 1)
    mean_ln = mean_in.mean(1, keepdims=True)
    temp = var_in + mean_in ** 2
    var_ln = temp.mean(1, keepdims=True) - mean_ln ** 2
    mean_bn = mean_in.mean(0, keepdims=True)
    var_bn = temp.mean(0, keepdims=True) - mean_bn ** 2
    mw = jax.nn.softmax(mean_weight, axis=0)
    vw = jax.nn.softmax(var_weight, axis=0)
    mean = mw[0] * mean_in + mw[1] * mean_ln + mw[2] * mean_bn
    var = vw[0] * var_in + vw[1] * var_ln + vw[2] * var_bn
    xn = (xr - mean) / jnp.sqrt(var + eps)
    xn = xn.reshape(N, C, H, W)
    return xn * weight + bias


if __name__ == "__main__":
    key = jax.random.PRNGKey(0)
    N, C, H, W = 2, 4, 16, 16
    x = jax.random.normal(key, (N, C, H, W), dtype=jnp.float32)

    # Deterministic parameter init (matches SwitchNorm2d.reset_parameters,
    # last_gamma=False): weight=1, bias=0, mean_weight=var_weight=ones(3).
    weight = jnp.ones((1, C, 1, 1), dtype=jnp.float32)
    bias = jnp.zeros((1, C, 1, 1), dtype=jnp.float32)
    mean_weight = jnp.ones((3,), dtype=jnp.float32)
    var_weight = jnp.ones((3,), dtype=jnp.float32)

    out = switch_norm_2d(x, weight, bias, mean_weight, var_weight)
    out = jax.block_until_ready(out)

    ref = _reference(x, weight, bias, mean_weight, var_weight)
    assert out.shape == (N, C, H, W)
    assert jnp.allclose(out, ref, atol=1e-4, rtol=1e-4), "mismatch vs reference"
    print("KERNEL_OK")
</pallas_src>

<mosaic_0001>
module attributes {stable_mosaic.version = 11 : i64} {
  func.func @_row_stats_kernel(%arg0: i32, %arg1: i32, %arg2: i32, %arg3: memref<8x256xf32, #tpu.memory_space<vmem>>, %arg4: memref<1x8x2xf32, #tpu.memory_space<vmem>>) attributes {dimension_semantics = [#tpu.dimension_semantics<parallel>, #tpu.dimension_semantics<parallel>, #tpu.dimension_semantics<arbitrary>], iteration_bounds = array<i64: 1, 1, 1>, scalar_prefetch = 0 : i64, scratch_operands = 0 : i64, tpu.core_type = #tpu.core_type<tc>, window_params = [{transform_indices = @transform_0, window_bounds = array<i64: 8, 256>}, {transform_indices = @transform_1, window_bounds = array<i64: 1, 8, 2>}]} {
    %c0_i32 = arith.constant 0 : i32
    %0 = arith.cmpi eq, %arg2, %c0_i32 : i32
    %1 = arith.extui %0 : i1 to i32
    %c0_i32_0 = arith.constant 0 : i32
    %2 = arith.cmpi ne, %1, %c0_i32_0 : i32
    scf.if %2 {
      %cst_10 = arith.constant 0.000000e+00 : f32
      %23 = vector.broadcast %cst_10 : f32 to vector<8x2xf32>
      %c0_11 = arith.constant 0 : index
      %c0_12 = arith.constant 0 : index
      %c0_13 = arith.constant 0 : index
      %24 = vector.load %arg4[%c0_11, %c0_12, %c0_13] : memref<1x8x2xf32, #tpu.memory_space<vmem>>, vector<1x8x2xf32>
      %25 = vector.shape_cast %24 : vector<1x8x2xf32> to vector<8x2xf32>
      %26 = vector.shape_cast %23 : vector<8x2xf32> to vector<1x8x2xf32>
      tpu.vector_store %arg4[%c0_11, %c0_12, %c0_13], %26 {strides = array<i32>} : memref<1x8x2xf32, #tpu.memory_space<vmem>>, vector<1x8x2xf32>,
    } else {
    }
    %c0 = arith.constant 0 : index
    %c0_1 = arith.constant 0 : index
    %3 = vector.load %arg3[%c0, %c0_1] : memref<8x256xf32, #tpu.memory_space<vmem>>, vector<8x256xf32>
    %cst = arith.constant dense<0.000000e+00> : vector<8xf32>
    %4 = vector.multi_reduction <add>, %3, %cst [1] : vector<8x256xf32> to vector<8xf32>
    %5 = vector.shape_cast %4 : vector<8xf32> to vector<8x1xf32>
    %6 = arith.mulf %3, %3 : vector<8x256xf32>
    %cst_2 = arith.constant dense<0.000000e+00> : vector<8xf32>
    %7 = vector.multi_reduction <add>, %6, %cst_2 [1] : vector<8x256xf32> to vector<8xf32>
    %8 = vector.shape_cast %7 : vector<8xf32> to vector<8x1xf32>
    %9 = tpu.iota {dimensions = array<i32: 1>} : vector<8x2xi32>
    %c0_3 = arith.constant 0 : index
    %c0_4 = arith.constant 0 : index
    %c0_5 = arith.constant 0 : index
    %10 = vector.load %arg4[%c0_3, %c0_4, %c0_5] : memref<1x8x2xf32, #tpu.memory_space<vmem>>, vector<1x8x2xf32>
    %11 = vector.shape_cast %10 : vector<1x8x2xf32> to vector<8x2xf32>
    %c0_i32_6 = arith.constant 0 : i32
    %12 = vector.broadcast %c0_i32_6 : i32 to vector<8x2xi32>
    %13 = arith.cmpi eq, %9, %12 : vector<8x2xi32>
    %14 = vector.shape_cast %5 : vector<8x1xf32> to vector<8x1xf32>
    %15 = vector.broadcast %14 : vector<8x1xf32> to vector<8x2xf32>
    %16 = vector.shape_cast %8 : vector<8x1xf32> to vector<8x1xf32>
    %17 = vector.broadcast %16 : vector<8x1xf32> to vector<8x2xf32>
    %18 = arith.select %13, %15, %17 : vector<8x2xi1>, vector<8x2xf32>
    %19 = arith.addf %11, %18 : vector<8x2xf32>
    %c0_7 = arith.constant 0 : index
    %c0_8 = arith.constant 0 : index
    %c0_9 = arith.constant 0 : index
    %20 = vector.load %arg4[%c0_7, %c0_8, %c0_9] : memref<1x8x2xf32, #tpu.memory_space<vmem>>, vector<1x8x2xf32>
    %21 = vector.shape_cast %20 : vector<1x8x2xf32> to vector<8x2xf32>
    %22 = vector.shape_cast %19 : vector<8x2xf32> to vector<1x8x2xf32>
    tpu.vector_store %arg4[%c0_7, %c0_8, %c0_9], %22 {strides = array<i32>} : memref<1x8x2xf32, #tpu.memory_space<vmem>>, vector<1x8x2xf32>,
    return
  }
  func.func @transform_0(%arg0: i32, %arg1: i32, %arg2: i32) -> (i32, i32) {
    %c1_i32 = arith.constant 1 : i32
    %0 = arith.muli %arg0, %c1_i32 : i32
    %1 = arith.addi %0, %arg2 : i32
    %c0_i32 = arith.constant 0 : i32
    return %arg1, %1 : i32, i32
  }
  func.func @transform_1(%arg0: i32, %arg1: i32, %arg2: i32) -> (i32, i32, i32) {
    %c0_i32 = arith.constant 0 : i32
    %c0_i32_0 = arith.constant 0 : i32
    return %arg0, %arg1, %c0_i32 : i32, i32, i32
  }
}

</mosaic_0001>

<bundles_post_ra>
// kernel: tpu_custom_call.1
= control target key start
LH: loop header
LB: loop body
LE: loop exit
PB: predicated region body
PF: predicated region fallthrough
CT: control target
= control target key end

     0   :  { %6 = vsyncpa [#allocation3], 0  ;;  %s81_s6 = smov [#allocation2]   ;;  %s116_s0 = inlined_call_operand.hbm [shape: f32[8,256], index: 0, kind: input, shape index: {}]   ;;  %s117_s1 = inlined_call_operand.vmem [shape: f32[1,8,2], index: 1, kind: output, shape index: {}]  }
   0x1   :  { %s17_s7 = sshll.u32 %s81_s6, 4  ;;  %s57_s10 = scalar_lea.hbm %s116_s0, 256  ;;  %s18_s7 = int_to_ptr.vmem [resolvable:$true] %s17_s7 }
   0x2   :  { %p58_p0 = scmp.ne.s32.totalorder %s116_s0, %s57_s10  ;;  %p61_p1 = scmp.lt.u32.totalorder %s57_s10, %s116_s0 }
   0x4   :  { %p63_p2 = pnand %p61_p1, %p58_p0 }
   0x6   :  { %66 = shalt.err (!%p63_p2)
}
   0x7   :  { %s67_s15 = scalar_lea.vmem %s18_s7, 256  ;;  %p72_p4 = scmp.lt.s32.totalorder %s18_s7, %s18_s7 }
   0x8   :  { %p68_p3 = scmp.ne.s32.totalorder %s18_s7, %s67_s15  ;;  %p73_p5 = scmp.lt.s32.totalorder %s67_s15, %s67_s15 }
   0xa   :  { %p74_p6 = por %p73_p5, %p72_p4 }
   0xc   :  { %p75_p7 = pnand %p74_p6, %p68_p3 }
   0xe   :  { %78 = shalt.err (!%p75_p7)
}
   0xf   :  { %20 = dma.hbm_to_vmem [thread:$0]  %s116_s0, 256, %s18_s7, [#allocation3]  }
  0x10   :  { %79 = dma.done.wait [#allocation3], 256  }
  0x11   :  { %80 = vsyncadd [#allocation3], 4294967040  ;;  %vm30_vm0 = vcmask 15360   ;;  %v82_v0 = vmov 0.0   ;;  %v32_v1 = vld [vmem:[#allocation2] sm:$0xff]  ;;  %v33_v2 = vld [vmem:[#allocation2 + $0x8] sm:$0xff]  ;;  %v42_v7 = vlaneseq }
  0x12   :  { %31 = vst.msk [vmem:[%s117_s1] sm:$0xff] %vm30_vm0, %v82_v0  ;;  %v34_v3 = vadd.f32 %v33_v2, %v32_v1  ;;  %v37_v4 = vmul.f32 %v32_v1, %v32_v1  ;;  %v38_v5 = vmul.f32 %v33_v2, %v33_v2 }
  0x13   :  { %v43_v8 = vand.u32 127, %v42_v7 }
  0x14   :  { %35 = vadd.xlane.f32.xlu0 %v34_v3  ;;  %v39_v6 = vadd.f32 %v38_v5, %v37_v4 }
  0x15   :  { %vm45_vm1 = vcmp.eq.s32.totalorder %v43_v8, 0 }
  0x18   :  { %40 = vadd.xlane.f32.xlu0 %v39_v6 }
  0x19   :  { %v44_v10 = vld [vmem:[%s117_s1] sm:$0xff] }
  0xa1   :  { %v36_v9 = vpop.xlane.xlu0 %35 }
  0xa5   :  { %v41_v11 = vpop.xlane.xlu0 %40 }
  0xa6   :  { %v46_v12 = vsel %vm45_vm1, %v36_v9, %v41_v11 }
  0xa7   :  { %v47_v13 = vadd.f32 %v46_v12, %v44_v10 }
  0xa9   :  { %49 = vst.msk [vmem:[%s117_s1] sm:$0xff] %vm30_vm0, %v47_v13 }
  0xaa   :  { %54 = vsyncpa [#allocation3], 1 }

</bundles_post_ra>
